<compile_context>
chip_gen: v7x
topology: tpu7x:2x2x1
jax: 0.10.0
libtpu: 0.0.40
codegen_flags: <defaults>
</compile_context>

<pallas_src>
import functools

import jax
import jax.numpy as jnp
from jax.experimental import pallas as pl
from jax.experimental.pallas import tpu as pltpu


def _cw_kernel(logits_ref, target_ref, out_ref, corr_ref, wrong_ref, *,
               kappa, batch_size, num_classes, tile_b, tile_c):
    b_idx = pl.program_id(0)
    c_idx = pl.program_id(1)
    num_c = pl.num_programs(1)

    @pl.when(c_idx == 0)
    def _init():
        corr_ref[...] = jnp.zeros_like(corr_ref)
        wrong_ref[...] = jnp.full_like(wrong_ref, -jnp.inf)

    x = logits_ref[...]                         # (tile_b, tile_c), native dtype
    if not jnp.issubdtype(x.dtype, jnp.floating):
        x = x.astype(jnp.float32)
    t = target_ref[...]                         # (tile_b, 1) int32

    col = c_idx * tile_c + jax.lax.broadcasted_iota(jnp.int32, x.shape, dimension=1)
    is_label = col == t                         # (tile_b, tile_c) bool
    col_valid = col < num_classes               # masks padded class columns

    zero = jnp.zeros((), x.dtype)
    neg_inf = jnp.array(-jnp.inf, x.dtype)

    # Correct-class logit: exactly one selected element over the whole class
    # axis (sum over zeros + that element is exact in any float dtype).
    tile_corr = jnp.sum(jnp.where(is_label, x, zero), axis=1, keepdims=True)
    corr_ref[...] += tile_corr.astype(jnp.float32)

    # PyTorch quirk preserved: the label column contributes 0 (not -inf) to the
    # max; padded class columns contribute -inf so they can never win.
    wrong_contrib = jnp.where(col_valid, jnp.where(is_label, zero, x), neg_inf)
    tile_wrong = jnp.max(wrong_contrib, axis=1, keepdims=True).astype(jnp.float32)
    wrong_ref[...] = jnp.maximum(wrong_ref[...], tile_wrong)

    @pl.when(c_idx == num_c - 1)
    def _finalize():
        margin = jnp.maximum(
            corr_ref[...] - wrong_ref[...] + jnp.float32(kappa), 0.0)      # relu
        row = b_idx * tile_b + jax.lax.broadcasted_iota(jnp.int32, margin.shape, 0)
        margin = jnp.where(row < batch_size, margin, 0.0)   # select: padded rows can't leak
        partial = -jnp.sum(margin)
        # Scatter the scalar partial into lane/sublane [0,0] of an (8,128)
        # aligned block (unmasked, rule-satisfying store); rest stays zero.
        r = jax.lax.broadcasted_iota(jnp.int32, out_ref.shape, 1)
        c = jax.lax.broadcasted_iota(jnp.int32, out_ref.shape, 2)
        out_ref[...] = jnp.where((r == 0) & (c == 0), partial, 0.0)


def _ceil_to_8(n):
    return ((n + 7) // 8) * 8


def carlini_wagner_loss(logits, target, kappa=10.0, tile_budget_bytes=None):
    """logits: (B, C) float (any dtype), target: (B,) int -> scalar f32 loss."""
    B, C = logits.shape
    t2 = target.reshape(B, 1).astype(jnp.int32)
    itemsize = jnp.dtype(logits.dtype).itemsize

    # ---- per-generation tile budget: bytes of logits resident per grid step.
    if tile_budget_bytes is None:
        try:
            phys_vmem = pltpu.get_tpu_info().vmem_capacity_bytes
        except Exception:               # no info available -> conservative (v7x per-TC)
            phys_vmem = 64 << 20
        # ~1/32 of physical VMEM: ~4 MiB/step on v5e/v6e (128 MiB), ~2 MiB on
        # v7x (64 MiB). With x2 pipeline buffers + native-dtype temporaries the
        # live VMEM stays well inside the 32 MiB scoped limit requested below.
        tile_budget_bytes = max(1 << 20, phys_vmem // 32)
    tile_budget_bytes = int(tile_budget_bytes)

    row_bytes = max(C * itemsize, 1)

    # ---- batch tile (sublane dim): multiple of 8 or full extent.
    if B <= 8:
        tb = B
    else:
        budget_rows = tile_budget_bytes // row_bytes
        tb = max(8, (min(budget_rows, B) // 8) * 8)
        if tb >= B:
            tb = B
        if tb == B and B >= 16:
            # v7x megacore: give the "parallel" batch axis at least 2 tiles.
            tb = _ceil_to_8(-(-B // 2))
    num_b = pl.cdiv(B, tb)

    # ---- class tile (lane dim): full extent when it fits the budget, else a
    # multiple of 128 with an online running-sum / running-max across C-tiles
    # (bounds VMEM independently of C — vocab-sized logits included).
    if C <= 128 or tb * row_bytes <= tile_budget_bytes:
        tc = C
    else:
        tc = (tile_budget_bytes // max(tb * itemsize, 1)) // 128 * 128
        tc = int(min(max(tc, 128), C))
    num_c = pl.cdiv(C, tc)

    kernel = functools.partial(
        _cw_kernel, kappa=float(kappa), batch_size=B, num_classes=C,
        tile_b=tb, tile_c=tc)

    partials = pl.pallas_call(
        kernel,
        out_shape=jax.ShapeDtypeStruct((num_b, 8, 128), jnp.float32),
        grid=(num_b, num_c),
        in_specs=[
            pl.BlockSpec((tb, tc), lambda b, c: (b, c)),   # logits tile (native dtype)
            pl.BlockSpec((tb, 1), lambda b, c: (b, 0)),    # target tile
        ],
        out_specs=pl.BlockSpec((1, 8, 128), lambda b, c: (b, 0, 0)),
        scratch_shapes=[
            pltpu.VMEM((tb, 1), jnp.float32),   # running correct-class sum
            pltpu.VMEM((tb, 1), jnp.float32),   # running "wrong" max
        ],
        compiler_params=pltpu.CompilerParams(
            dimension_semantics=("parallel", "arbitrary"),
            vmem_limit_bytes=32 * 1024 * 1024,
        ),
    )(logits, t2)

    return jnp.sum(partials)


def carlini_wagner_loss_ref(logits, target, kappa=10.0):
    """Plain-JAX reference (mirrors the PyTorch forward exactly)."""
    x = logits.astype(jnp.float32)
    num_classes = x.shape[1]
    label_mask = jax.nn.one_hot(target, num_classes, dtype=jnp.float32)
    correct_logit = jnp.sum(label_mask * x, axis=1)
    wrong_logit = jnp.max((1.0 - label_mask) * x, axis=1)
    return -jnp.sum(jax.nn.relu(correct_logit - wrong_logit + kappa))


if __name__ == "__main__":
    key = jax.random.PRNGKey(0)
    k1, k2, k3, k4, k5, k6 = jax.random.split(key, 6)

    # Case 1: canonical CW shapes (batch=8, classes=10), f32, single tile.
    B1, C1 = 8, 10
    logits1 = jax.random.normal(k1, (B1, C1), dtype=jnp.float32) * 3.0
    target1 = jax.random.randint(k2, (B1,), 0, C1, dtype=jnp.int32)
    loss1 = jax.block_until_ready(carlini_wagner_loss(logits1, target1, kappa=10.0))
    ref1 = carlini_wagner_loss_ref(logits1, target1, kappa=10.0)
    assert jnp.allclose(loss1, ref1, rtol=1e-5, atol=1e-5), (loss1, ref1)

    # Case 2: bf16 input, >=2 "parallel" batch tiles with a ragged batch tail.
    B2, C2 = 20, 10
    logits2 = (jax.random.normal(k3, (B2, C2), dtype=jnp.float32) * 3.0).astype(jnp.bfloat16)
    target2 = jax.random.randint(k4, (B2,), 0, C2, dtype=jnp.int32)
    loss2 = jax.block_until_ready(carlini_wagner_loss(logits2, target2, kappa=10.0))
    ref2 = carlini_wagner_loss_ref(logits2, target2, kappa=10.0)
    assert jnp.allclose(loss2, ref2, rtol=1e-2, atol=1e-2), (loss2, ref2)

    # Case 3: force the C-tiled online-reduction path with a tiny budget:
    # ragged class tail (C=600 -> 256-wide tiles, padded last tile) and a
    # ragged batch tail (B=20 -> 8-row tiles).
    B3, C3 = 20, 600
    logits3 = jax.random.normal(k5, (B3, C3), dtype=jnp.float32) * 3.0
    target3 = jax.random.randint(k6, (B3,), 0, C3, dtype=jnp.int32)
    loss3 = jax.block_until_ready(
        carlini_wagner_loss(logits3, target3, kappa=5.0, tile_budget_bytes=8 * 1024))
    ref3 = carlini_wagner_loss_ref(logits3, target3, kappa=5.0)
    assert jnp.allclose(loss3, ref3, rtol=1e-4, atol=1e-4), (loss3, ref3)

    print("KERNEL_OK")
</pallas_src>

<mosaic_0001>
module attributes {stable_mosaic.version = 11 : i64} {
  func.func @_cw_kernel(%arg0: i32, %arg1: i32, %arg2: memref<8x10xf32, #tpu.memory_space<vmem>>, %arg3: memref<8x1xi32, #tpu.memory_space<vmem>>, %arg4: memref<1x8x128xf32, #tpu.memory_space<vmem>>, %arg5: memref<8x1xf32, #tpu.memory_space<vmem>>, %arg6: memref<8x1xf32, #tpu.memory_space<vmem>>) attributes {dimension_semantics = [#tpu.dimension_semantics<parallel>, #tpu.dimension_semantics<arbitrary>], iteration_bounds = array<i64: 1, 1>, scalar_prefetch = 0 : i64, scratch_operands = 2 : i64, tpu.core_type = #tpu.core_type<tc>, window_params = [{transform_indices = @transform_0, window_bounds = array<i64: 8, 10>}, {transform_indices = @transform_1, window_bounds = array<i64: 8, 1>}, {transform_indices = @transform_2, window_bounds = array<i64: 1, 8, 128>}]} {
    %c0_i32 = arith.constant 0 : i32
    %0 = arith.cmpi eq, %arg1, %c0_i32 : i32
    %1 = arith.extui %0 : i1 to i32
    %c0_i32_0 = arith.constant 0 : i32
    %2 = arith.cmpi ne, %1, %c0_i32_0 : i32
    scf.if %2 {
      %cst_19 = arith.constant 0.000000e+00 : f32
      %32 = vector.broadcast %cst_19 : f32 to vector<8x1xf32>
      %c0_20 = arith.constant 0 : index
      %c0_21 = arith.constant 0 : index
      %33 = vector.load %arg5[%c0_20, %c0_21] : memref<8x1xf32, #tpu.memory_space<vmem>>, vector<8x1xf32>
      tpu.vector_store %arg5[%c0_20, %c0_21], %32 {strides = array<i32>} : memref<8x1xf32, #tpu.memory_space<vmem>>, vector<8x1xf32>,
      %cst_22 = arith.constant 0xFF800000 : f32
      %34 = vector.broadcast %cst_22 : f32 to vector<8x1xf32>
      %c0_23 = arith.constant 0 : index
      %c0_24 = arith.constant 0 : index
      %35 = vector.load %arg6[%c0_23, %c0_24] : memref<8x1xf32, #tpu.memory_space<vmem>>, vector<8x1xf32>
      tpu.vector_store %arg6[%c0_23, %c0_24], %34 {strides = array<i32>} : memref<8x1xf32, #tpu.memory_space<vmem>>, vector<8x1xf32>,
    } else {
    }
    %c0 = arith.constant 0 : index
    %c0_1 = arith.constant 0 : index
    %3 = vector.load %arg2[%c0, %c0_1] : memref<8x10xf32, #tpu.memory_space<vmem>>, vector<8x10xf32>
    %c0_2 = arith.constant 0 : index
    %c0_3 = arith.constant 0 : index
    %4 = vector.load %arg3[%c0_2, %c0_3] : memref<8x1xi32, #tpu.memory_space<vmem>>, vector<8x1xi32>
    %c10_i32 = arith.constant 10 : i32
    %5 = arith.muli %arg1, %c10_i32 : i32
    %6 = tpu.iota {dimensions = array<i32: 1>} : vector<8x10xi32>
    %7 = vector.broadcast %5 : i32 to vector<8x10xi32>
    %8 = arith.addi %7, %6 : vector<8x10xi32>
    %9 = vector.broadcast %4 : vector<8x1xi32> to vector<8x10xi32>
    %10 = arith.cmpi eq, %8, %9 : vector<8x10xi32>
    %c10_i32_4 = arith.constant 10 : i32
    %11 = vector.broadcast %c10_i32_4 : i32 to vector<8x10xi32>
    %12 = arith.cmpi slt, %8, %11 : vector<8x10xi32>
    %cst = arith.constant 0.000000e+00 : f32
    %13 = vector.broadcast %cst : f32 to vector<8x10xf32>
    %14 = arith.select %10, %3, %13 : vector<8x10xi1>, vector<8x10xf32>
    %cst_5 = arith.constant dense<0.000000e+00> : vector<8xf32>
    %15 = vector.multi_reduction <add>, %14, %cst_5 [1] : vector<8x10xf32> to vector<8xf32>
    %16 = vector.shape_cast %15 : vector<8xf32> to vector<8x1xf32>
    %c0_6 = arith.constant 0 : index
    %c0_7 = arith.constant 0 : index
    %17 = vector.load %arg5[%c0_6, %c0_7] : memref<8x1xf32, #tpu.memory_space<vmem>>, vector<8x1xf32>
    %18 = arith.addf %17, %16 : vector<8x1xf32>
    %c0_8 = arith.constant 0 : index
    %c0_9 = arith.constant 0 : index
    %19 = vector.load %arg5[%c0_8, %c0_9] : memref<8x1xf32, #tpu.memory_space<vmem>>, vector<8x1xf32>
    tpu.vector_store %arg5[%c0_8, %c0_9], %18 {strides = array<i32>} : memref<8x1xf32, #tpu.memory_space<vmem>>, vector<8x1xf32>,
    %cst_10 = arith.constant 0.000000e+00 : f32
    %20 = vector.broadcast %cst_10 : f32 to vector<8x10xf32>
    %21 = arith.select %10, %20, %3 : vector<8x10xi1>, vector<8x10xf32>
    %cst_11 = arith.constant 0xFF800000 : f32
    %22 = vector.broadcast %cst_11 : f32 to vector<8x10xf32>
    %23 = arith.select %12, %21, %22 : vector<8x10xi1>, vector<8x10xf32>
    %cst_12 = arith.constant dense<0xFF800000> : vector<8xf32>
    %24 = vector.multi_reduction <maximumf>, %23, %cst_12 [1] : vector<8x10xf32> to vector<8xf32>
    %25 = vector.shape_cast %24 : vector<8xf32> to vector<8x1xf32>
    %c0_13 = arith.constant 0 : index
    %c0_14 = arith.constant 0 : index
    %26 = vector.load %arg6[%c0_13, %c0_14] : memref<8x1xf32, #tpu.memory_space<vmem>>, vector<8x1xf32>
    %27 = arith.maximumf %26, %25 : vector<8x1xf32>
    %c0_15 = arith.constant 0 : index
    %c0_16 = arith.constant 0 : index
    %28 = vector.load %arg6[%c0_15, %c0_16] : memref<8x1xf32, #tpu.memory_space<vmem>>, vector<8x1xf32>
    tpu.vector_store %arg6[%c0_15, %c0_16], %27 {strides = array<i32>} : memref<8x1xf32, #tpu.memory_space<vmem>>, vector<8x1xf32>,
    %c0_i32_17 = arith.constant 0 : i32
    %29 = arith.cmpi eq, %arg1, %c0_i32_17 : i32
    %30 = arith.extui %29 : i1 to i32
    %c0_i32_18 = arith.constant 0 : i32
    %31 = arith.cmpi ne, %30, %c0_i32_18 : i32
    scf.if %31 {
      %c0_19 = arith.constant 0 : index
      %c0_20 = arith.constant 0 : index
      %32 = vector.load %arg5[%c0_19, %c0_20] : memref<8x1xf32, #tpu.memory_space<vmem>>, vector<8x1xf32>
      %c0_21 = arith.constant 0 : index
      %c0_22 = arith.constant 0 : index
      %33 = vector.load %arg6[%c0_21, %c0_22] : memref<8x1xf32, #tpu.memory_space<vmem>>, vector<8x1xf32>
      %34 = arith.subf %32, %33 : vector<8x1xf32>
      %cst_23 = arith.constant 1.000000e+01 : f32
      %35 = vector.broadcast %cst_23 : f32 to vector<8x1xf32>
      %36 = arith.addf %34, %35 : vector<8x1xf32>
      %cst_24 = arith.constant 0.000000e+00 : f32
      %37 = vector.broadcast %cst_24 : f32 to vector<8x1xf32>
      %38 = arith.maximumf %36, %37 : vector<8x1xf32>
      %c8_i32 = arith.constant 8 : i32
      %39 = arith.muli %arg0, %c8_i32 : i32
      %40 = tpu.iota {dimensions = array<i32: 0>} : vector<8x1xi32>
      %41 = vector.broadcast %39 : i32 to vector<8x1xi32>
      %42 = arith.addi %41, %40 : vector<8x1xi32>
      %c8_i32_25 = arith.constant 8 : i32
      %43 = vector.broadcast %c8_i32_25 : i32 to vector<8x1xi32>
      %44 = arith.cmpi slt, %42, %43 : vector<8x1xi32>
      %cst_26 = arith.constant 0.000000e+00 : f32
      %45 = vector.broadcast %cst_26 : f32 to vector<8x1xf32>
      %46 = arith.select %44, %38, %45 : vector<8x1xi1>, vector<8x1xf32>
      %47 = vector.shape_cast %46 : vector<8x1xf32> to vector<1x8x1xf32>
      %cst_27 = arith.constant dense<0.000000e+00> : vector<1xf32>
      %48 = vector.multi_reduction <add>, %47, %cst_27 [1, 2] : vector<1x8x1xf32> to vector<1xf32>
      %49 = vector.shape_cast %48 : vector<1xf32> to vector<1x1x1xf32>
      %50 = vector.extract %49[0, 0, 0] : f32 from vector<1x1x1xf32>
      %cst_28 = arith.constant 0.000000e+00 : f32
      %51 = arith.subf %cst_28, %50 : f32
      %52 = tpu.iota {dimensions = array<i32: 1>} : vector<1x8x128xi32>
      %53 = tpu.iota {dimensions = array<i32: 2>} : vector<1x8x128xi32>
      %c0_i32_29 = arith.constant 0 : i32
      %54 = vector.broadcast %c0_i32_29 : i32 to vector<1x8x128xi32>
      %55 = arith.cmpi eq, %52, %54 : vector<1x8x128xi32>
      %c0_i32_30 = arith.constant 0 : i32
      %56 = vector.broadcast %c0_i32_30 : i32 to vector<1x8x128xi32>
      %57 = arith.cmpi eq, %53, %56 : vector<1x8x128xi32>
      %58 = arith.andi %55, %57 : vector<1x8x128xi1>
      %cst_31 = arith.constant 0.000000e+00 : f32
      %59 = vector.broadcast %51 : f32 to vector<1x8x128xf32>
      %60 = vector.broadcast %cst_31 : f32 to vector<1x8x128xf32>
      %61 = arith.select %58, %59, %60 : vector<1x8x128xi1>, vector<1x8x128xf32>
      %c0_32 = arith.constant 0 : index
      %c0_33 = arith.constant 0 : index
      %c0_34 = arith.constant 0 : index
      %62 = vector.load %arg4[%c0_32, %c0_33, %c0_34] : memref<1x8x128xf32, #tpu.memory_space<vmem>>, vector<1x8x128xf32>
      tpu.vector_store %arg4[%c0_32, %c0_33, %c0_34], %61 {strides = array<i32>} : memref<1x8x128xf32, #tpu.memory_space<vmem>>, vector<1x8x128xf32>,
    } else {
    }
    return
  }
  func.func @transform_0(%arg0: i32, %arg1: i32) -> (i32, i32) {
    %c0_i32 = arith.constant 0 : i32
    return %arg0, %arg1 : i32, i32
  }
  func.func @transform_1(%arg0: i32, %arg1: i32) -> (i32, i32) {
    %c0_i32 = arith.constant 0 : i32
    %c0_i32_0 = arith.constant 0 : i32
    return %arg0, %c0_i32 : i32, i32
  }
  func.func @transform_2(%arg0: i32, %arg1: i32) -> (i32, i32, i32) {
    %c0_i32 = arith.constant 0 : i32
    %c0_i32_0 = arith.constant 0 : i32
    %c0_i32_1 = arith.constant 0 : i32
    return %arg0, %c0_i32, %c0_i32_0 : i32, i32, i32
  }
}

</mosaic_0001>

<bundles_post_ra>
// kernel: tpu_custom_call.1
= control target key start
LH: loop header
LB: loop body
LE: loop exit
PB: predicated region body
PF: predicated region fallthrough
CT: control target
= control target key end

     0   :  { %s167_s0 = inlined_call_operand.vmem [shape: f32[8,10], index: 0, kind: input, shape index: {}]   ;;  %s168_s1 = inlined_call_operand.vmem [shape: s32[8,1], index: 1, kind: input, shape index: {}]   ;;  %s169_s2 = inlined_call_operand.hbm [shape: f32[1,8,128], index: 2, kind: output, shape index: {}]  }
   0x1   :  { %v20_v0 = vld [vmem:[%s168_s1] sm:$0xff] }
   0x2   :  { %7 = vsyncpa [#allocation5], 0  ;;  %v125_v1 = vmov 0   ;;  %v22_v2 = vlaneseq  ;;  %v19_v4 = vld [vmem:[%s167_s0] sm:$0xff]  ;;  %vm32_vm0 = vcmask 80896   ;;  %vm16_vm3 = vcmask 7168  }
   0x3   :  { %100 = vset.pattern.permute.xlu0 %v125_v1  ;;  %v126_v11 = vmov 0.0   ;;  %v127_v12 = vmov -inf   ;;  %s128_s1 = smov [#allocation4]  }
   0x4   :  { %27 = vperm.xlu0 %100, %v20_v0   ;;  %v23_v3 = vand.u32 127, %v22_v2  ;;  %17 = vst.msk [vmem:[#allocation2] sm:$0xff] %vm16_vm3, %v126_v11  ;;  %18 = vst.msk [vmem:[#allocation3] sm:$0xff] %vm16_vm3, %v127_v12  ;;  %v58_v32 = vshrl.u32 %v22_v2, 7  ;;  %s86_s13 = sshll.u32 %s128_s1, 4  ;;  %s87_s13 = int_to_ptr.vmem [resolvable:$true] %s86_s13 }
   0x5   :  { %s101_s15 = scalar_lea.vmem %s87_s13, 128  ;;  %p106_p1 = scmp.lt.s32.totalorder %s87_s13, %s87_s13 }
   0x6   :  { %vm30_vm1 = vcmp.lt.s32.totalorder %v23_v3, 10  ;;  %vm74_vm4 = vcmp.eq.s32.totalorder %v58_v32, 0  ;;  %vm75_vm5 = vcmp.eq.s32.totalorder %v23_v3, 0  ;;  %p102_p0 = scmp.ne.s32.totalorder %s87_s13, %s101_s15  ;;  %p107_p2 = scmp.lt.s32.totalorder %s101_s15, %s101_s15 }
   0x7   :  { %vm76_vm6 = vmand %vm74_vm4, %vm75_vm5 }
   0x8   :  { %p108_p3 = por %p107_p2, %p106_p1 }
   0xa   :  { %p109_p4 = pnand %p108_p3, %p102_p0 }
   0xb   :  { %v36_v13 = vld [vmem:[#allocation2] sm:$0xff]  ;;  %v45_v14 = vld [vmem:[#allocation3] sm:$0xff] }
  0x83   :  { %v28_v5 = vpop.permute.xlu0 %27 }
  0x84   :  { %vm29_vm2 = vcmp.eq.s32.totalorder %v23_v3, %v28_v5 }
  0x85   :  { %v40_v6 = vsel %vm29_vm2, 0.0, %v19_v4  ;;  %v31_v7 = vsel %vm29_vm2, %v19_v4, 0.0 }
  0x86   :  { %v33_v8 = vsel %vm32_vm0, %v31_v7, 0.0  ;;  %v41_v9 = vsel %vm30_vm1, %v40_v6, -inf }
  0x87   :  { %34 = vadd.xlane.f32.xlu0 %v33_v8  ;;  %v42_v10 = vsel %vm32_vm0, %v41_v9, -inf }
  0x88   :  { %43 = vmax.xlane.f32.xlu1 %v42_v10 }
 0x114   :  { %v35_v15 = vpop.xlane.xlu0 %34 }
 0x115   :  { %v37_v16 = vadd.f32 %v36_v13, %v35_v15  ;;  %v44_v17 = vpop.xlane.xlu1 %43 }
 0x116   :  { %v46_v18 = vmax.f32 %v45_v14, %v44_v17 }
 0x117   :  { %39 = vst.msk [vmem:[#allocation2] sm:$0xff] %vm16_vm3, %v37_v16 }
 0x118   :  { %47 = vst.msk [vmem:[#allocation3] sm:$0xff] %vm16_vm3, %v46_v18 }
 0x11e   :  { %v51_v19 = vld [vmem:[#allocation2] sm:$0xff] }
 0x11f   :  { %v52_v20 = vld [vmem:[#allocation3] sm:$0xff] }
 0x120   :  { %v53_v21 = vsub.f32 %v51_v19, %v52_v20 }
 0x122   :  { %v54_v22 = vadd.f32 10.0, %v53_v21 }
 0x124   :  { %v55_v23 = vmax.f32 %v54_v22, 0.0 }
 0x126   :  { %v63_v24 = vsel %vm16_vm3, %v55_v23, 0.0 }
 0x127   :  { %64 = vadd.xlane.f32.xlu1 %v63_v24 }
 0x1b4   :  { %v65_v25 = vpop.xlane.xlu1 %64 }
 0x1b5   :  { %v66_v26 = vrot.slane %v65_v25, 4 }
 0x1b7   :  { %v67_v27 = vadd.f32 %v66_v26, %v65_v25 }
 0x1b9   :  { %v68_v28 = vrot.slane %v67_v27, 2 }
 0x1bb   :  { %v69_v29 = vadd.f32 %v68_v28, %v67_v27 }
 0x1bd   :  { %v70_v30 = vrot.slane %v69_v29, 1 }
 0x1bf   :  { %v71_v31 = vadd.f32 %v70_v30, %v69_v29 }
 0x1c1   :  { %94 = vpush %v71_v31 }
 0x1f2   :  { %s95_s0 = spop %94 }
 0x1f3   :  { %s73_s14 = ssub.f32 0.0, %s95_s0 }
 0x1f5   :  { %v77_v33 = vstv %s73_s14 }
 0x1f6   :  { %v78_v34 = vsel %vm76_vm6, %v77_v33, 0.0 }
 0x1f7   :  { %79 = vst [vmem:[#allocation4] sm:$0xff] %v78_v34 }
 0x1f8   :  { %112 = shalt.err (!%p109_p4)
}
 0x1f9   :  { %s113_s18 = scalar_lea.hbm %s169_s2, 128 }
 0x1fa   :  { %p114_p5 = scmp.ne.s32.totalorder %s169_s2, %s113_s18  ;;  %p117_p6 = scmp.lt.u32.totalorder %s113_s18, %s169_s2 }
 0x1fc   :  { %p119_p7 = pnand %p117_p6, %p114_p5 }
 0x1fe   :  { %122 = shalt.err (!%p119_p7)
}
 0x1ff   :  { %89 = dma.vmem_to_hbm [thread:$0]  %s87_s13, 128, %s169_s2, [#allocation5]  }
 0x200   :  { %123 = dma.done.wait [#allocation5], 128  }
 0x201   :  { %124 = vsyncadd [#allocation5], 4294967168 }
 0x202   :  { %93 = vsyncpa [#allocation5], 1 }

</bundles_post_ra>
